<compile_context>
chip_gen: v6e
topology: v6e:2x2x1
jax: 0.10.0
libtpu: 0.0.40
codegen_flags: <defaults>
</compile_context>

<pallas_src>
import math

import jax
import jax.numpy as jnp
from jax.experimental import pallas as pl
from jax.experimental.pallas import tpu as pltpu


# ----------------------------------------------------------------------------
# Kernel 1: LayerNorm(ln_1) + fused QKV projection.
# ----------------------------------------------------------------------------
def ln_qkv_kernel(x_ref, g1_ref, b1_ref, wqkv_ref, qkv_ref):
    x = x_ref[0]                                     # (tq, D) f32
    mu = jnp.mean(x, axis=-1, keepdims=True)
    var = jnp.mean((x - mu) ** 2, axis=-1, keepdims=True)
    h = (x - mu) * jax.lax.rsqrt(var + 1e-5)
    h = h * g1_ref[...] + b1_ref[...]                # f32 LN stats / affine
    qkv = jnp.dot(h.astype(jnp.bfloat16), wqkv_ref[...],
                  preferred_element_type=jnp.float32)   # MXU, f32 accumulate
    qkv_ref[0] = qkv.astype(qkv_ref.dtype)           # store bf16, lane-dense 3D


# ----------------------------------------------------------------------------
# Kernel 2: flash attention (online softmax over k tiles) + o_proj + residual
#           + LN2 + MLP(GELU tanh) + residual.
# ----------------------------------------------------------------------------
def attn_mlp_kernel(x_ref, q_ref, k_ref, v_ref, wo_ref, g2_ref, b2_ref,
                    wfc_ref, bfc_ref, wpr_ref, bpr_ref, o_ref,
                    m_sc, l_sc, acc_sc):
    qi = pl.program_id(1)
    ki = pl.program_id(2)
    nk = pl.num_programs(2)
    tq = q_ref.shape[2]
    tk = k_ref.shape[2]
    NEG = -1e30                                      # finite mask bias

    @pl.when(ki == 0)
    def _init():
        m_sc[...] = jnp.full_like(m_sc, NEG)
        l_sc[...] = jnp.zeros_like(l_sc)
        acc_sc[...] = jnp.zeros_like(acc_sc)

    q_start = qi * tq
    k_start = ki * tk

    # Skip k tiles that lie entirely above the causal diagonal.
    @pl.when(k_start < q_start + tq)
    def _online_softmax():
        q = q_ref[0]                                 # (H, tq, Dh) bf16 (pre-scaled)
        k = k_ref[0]                                 # (H, tk, Dh) bf16
        v = v_ref[0]                                 # (H, tk, Dh) bf16
        # Heads batched into one dot_general; contraction on last dims (no k.T).
        s = jnp.einsum('hqd,hkd->hqk', q, k,
                       preferred_element_type=jnp.float32)     # (H, tq, tk) f32
        rows = q_start + jax.lax.broadcasted_iota(jnp.int32, (tq, tk), 0)
        cols = k_start + jax.lax.broadcasted_iota(jnp.int32, (tq, tk), 1)
        bias = jnp.where(rows >= cols, 0.0, NEG).astype(jnp.float32)
        s = s + bias[None, :, :]

        m_prev = m_sc[...]
        m_new = jnp.maximum(m_prev, jnp.max(s, axis=-1, keepdims=True))
        alpha = jnp.exp(m_prev - m_new)
        p = jnp.exp(s - m_new)
        l_sc[...] = alpha * l_sc[...] + jnp.sum(p, axis=-1, keepdims=True)
        acc_sc[...] = alpha * acc_sc[...] + jnp.einsum(
            'hqk,hkd->hqd', p.astype(v.dtype), v,
            preferred_element_type=jnp.float32)
        m_sc[...] = m_new

    @pl.when(ki == nk - 1)
    def _finalize():
        inv_l = pl.reciprocal(l_sc[...], approx=True)            # EUP, ~free
        o_heads = (acc_sc[...] * inv_l).astype(jnp.bfloat16)     # (H, tq, Dh)
        # Head merge + output projection as a head-batched matmul followed by a
        # cheap sum over the leading head axis (no in-kernel lane relayout).
        att = jnp.einsum('hqd,hdo->hqo', o_heads, wo_ref[...],
                         preferred_element_type=jnp.float32)     # (H, tq, D)
        att = jnp.sum(att, axis=0)                               # (tq, D)

        x = x_ref[0]                                             # (tq, D) f32
        x1 = x + att                                             # residual 1

        mu = jnp.mean(x1, axis=-1, keepdims=True)
        var = jnp.mean((x1 - mu) ** 2, axis=-1, keepdims=True)
        h2 = (x1 - mu) * jax.lax.rsqrt(var + 1e-5)
        h2 = h2 * g2_ref[...] + b2_ref[...]

        z = jnp.dot(h2.astype(jnp.bfloat16), wfc_ref[...],
                    preferred_element_type=jnp.float32) + bfc_ref[...]
        z = jax.nn.gelu(z, approximate=True)                     # GELU(tanh), EUP
        z = jnp.dot(z.astype(jnp.bfloat16), wpr_ref[...],
                    preferred_element_type=jnp.float32) + bpr_ref[...]
        o_ref[0] = (x1 + z).astype(o_ref.dtype)                  # residual 2


# ----------------------------------------------------------------------------
# Wrapper
# ----------------------------------------------------------------------------
def block_forward(x, params, n_heads, *, tq=None, tk=None):
    B, T, D = x.shape
    H = n_heads
    assert D % H == 0
    Dh = D // H
    (g1, b1, wqkv, wo, g2, b2, wfc, bfc, wpr, bpr) = params

    tq = T if tq is None else min(tq, T)
    tk = T if tk is None else min(tk, T)
    assert T % tq == 0 and T % tk == 0
    nq, nkt = T // tq, T // tk

    # Fold the 1/sqrt(Dh) attention scale into the q-columns of wqkv (exact
    # equivalent of scaling q before the score matmul, zero runtime cost).
    scale = 1.0 / math.sqrt(Dh)
    col_scale = jnp.concatenate(
        [jnp.full((D,), scale, jnp.float32), jnp.ones((2 * D,), jnp.float32)])
    wqkv_b = (wqkv * col_scale[None, :]).astype(jnp.bfloat16)
    wo_b = wo.reshape(H, Dh, D).astype(jnp.bfloat16)   # per-head o_proj blocks
    wfc_b = wfc.astype(jnp.bfloat16)
    wpr_b = wpr.astype(jnp.bfloat16)

    # ---- kernel 1: LN1 + QKV projection -------------------------------------
    qkv = pl.pallas_call(
        ln_qkv_kernel,
        out_shape=jax.ShapeDtypeStruct((B, T, 3 * D), jnp.bfloat16),
        grid_spec=pltpu.PrefetchScalarGridSpec(
            num_scalar_prefetch=0,
            grid=(B, nq),
            in_specs=[
                pl.BlockSpec((1, tq, D), lambda b, i: (b, i, 0)),    # x
                pl.BlockSpec((1, D), lambda b, i: (0, 0)),           # ln1 gamma
                pl.BlockSpec((1, D), lambda b, i: (0, 0)),           # ln1 beta
                pl.BlockSpec((D, 3 * D), lambda b, i: (0, 0)),       # wqkv
            ],
            out_specs=pl.BlockSpec((1, tq, 3 * D), lambda b, i: (b, i, 0)),
        ),
        compiler_params=pltpu.CompilerParams(
            dimension_semantics=("parallel", "parallel")),
    )(x, g1, b1, wqkv_b)

    # Layout plumbing (wrapper-side XLA, not in-kernel): split heads,
    # heads-major so the attention kernel batches all heads in one dot_general.
    qkv4 = qkv.reshape(B, T, 3 * H, Dh)
    q = qkv4[:, :, 0:H].transpose(0, 2, 1, 3)          # (B, H, T, Dh) bf16
    k = qkv4[:, :, H:2 * H].transpose(0, 2, 1, 3)
    v = qkv4[:, :, 2 * H:3 * H].transpose(0, 2, 1, 3)

    # ---- kernel 2: flash attention + o_proj + LN2 + MLP + residuals ----------
    out = pl.pallas_call(
        attn_mlp_kernel,
        out_shape=jax.ShapeDtypeStruct((B, T, D), x.dtype),
        grid_spec=pltpu.PrefetchScalarGridSpec(
            num_scalar_prefetch=0,
            grid=(B, nq, nkt),
            in_specs=[
                pl.BlockSpec((1, tq, D), lambda b, i, j: (b, i, 0)),         # x
                pl.BlockSpec((1, H, tq, Dh), lambda b, i, j: (b, 0, i, 0)),  # q
                pl.BlockSpec((1, H, tk, Dh), lambda b, i, j: (b, 0, j, 0)),  # k
                pl.BlockSpec((1, H, tk, Dh), lambda b, i, j: (b, 0, j, 0)),  # v
                pl.BlockSpec((H, Dh, D), lambda b, i, j: (0, 0, 0)),         # wo
                pl.BlockSpec((1, D), lambda b, i, j: (0, 0)),                # ln2 g
                pl.BlockSpec((1, D), lambda b, i, j: (0, 0)),                # ln2 b
                pl.BlockSpec((D, 4 * D), lambda b, i, j: (0, 0)),            # wfc
                pl.BlockSpec((1, 4 * D), lambda b, i, j: (0, 0)),            # bfc
                pl.BlockSpec((4 * D, D), lambda b, i, j: (0, 0)),            # wpr
                pl.BlockSpec((1, D), lambda b, i, j: (0, 0)),                # bpr
            ],
            out_specs=pl.BlockSpec((1, tq, D), lambda b, i, j: (b, i, 0)),
            scratch_shapes=[
                pltpu.VMEM((H, tq, 1), jnp.float32),    # running max m
                pltpu.VMEM((H, tq, 1), jnp.float32),    # running denom l
                pltpu.VMEM((H, tq, Dh), jnp.float32),   # running numerator
            ],
        ),
        compiler_params=pltpu.CompilerParams(
            dimension_semantics=("parallel", "parallel", "arbitrary")),
    )(x, q, k, v, wo_b, g2, b2, wfc_b, bfc, wpr_b, bpr)
    return out


# ----------------------------------------------------------------------------
# Pure-JAX f32 reference mirroring the PyTorch module, for verification.
# ----------------------------------------------------------------------------
def reference_forward(x, params, n_heads):
    (g1, b1, wqkv, wo, g2, b2, wfc, bfc, wpr, bpr) = params
    B, T, D = x.shape
    Dh = D // n_heads
    eps = 1e-5

    def ln(h, g, b):
        mu = jnp.mean(h, -1, keepdims=True)
        var = jnp.mean((h - mu) ** 2, -1, keepdims=True)
        return (h - mu) / jnp.sqrt(var + eps) * g + b

    h1 = ln(x, g1, b1)
    qkv = h1 @ wqkv                                        # (B, T, 3D)
    qkv = qkv.reshape(B, T, 3 * n_heads, Dh).transpose(0, 2, 1, 3)
    q, k, v = jnp.split(qkv, 3, axis=1)                    # each (B, H, T, Dh)
    s = jnp.einsum("bhqd,bhkd->bhqk", q, k) / math.sqrt(Dh)
    mask = jnp.tril(jnp.ones((T, T), bool))
    s = jnp.where(mask, s, -jnp.inf)
    p = jax.nn.softmax(s, axis=-1)
    y = jnp.einsum("bhqk,bhkd->bhqd", p, v)
    y = y.transpose(0, 2, 1, 3).reshape(B, T, D) @ wo
    x1 = x + y
    h2 = ln(x1, g2, b2)
    z = jax.nn.gelu(h2 @ wfc + bfc, approximate=True) @ wpr + bpr
    return x1 + z


if __name__ == "__main__":
    B, T, D, H = 2, 32, 32, 4

    key = jax.random.PRNGKey(0)
    ks = jax.random.split(key, 11)

    # Deterministic synthetic parameters (Linear weights stored as [in, out]).
    g1 = 1.0 + 0.1 * jax.random.normal(ks[7], (1, D), jnp.float32)
    b1 = 0.05 * jax.random.normal(ks[8], (1, D), jnp.float32)
    wqkv = jax.random.normal(ks[0], (D, 3 * D), jnp.float32) * 0.05
    wo = jax.random.normal(ks[1], (D, D), jnp.float32) * 0.05
    g2 = 1.0 + 0.1 * jax.random.normal(ks[9], (1, D), jnp.float32)
    b2 = 0.05 * jax.random.normal(ks[10], (1, D), jnp.float32)
    wfc = jax.random.normal(ks[2], (D, 4 * D), jnp.float32) * 0.05
    bfc = jax.random.normal(ks[3], (1, 4 * D), jnp.float32) * 0.05
    wpr = jax.random.normal(ks[4], (4 * D, D), jnp.float32) * 0.05
    bpr = jax.random.normal(ks[5], (1, D), jnp.float32) * 0.05
    params = (g1, b1, wqkv, wo, g2, b2, wfc, bfc, wpr, bpr)

    x = jax.random.normal(ks[6], (B, T, D), jnp.float32)

    # Use sequence tiles smaller than T to exercise the flash/online-softmax
    # path (2 q-tiles x 2 k-tiles, with one fully-skipped causal tile).
    out = block_forward(x, params, H, tq=16, tk=16)
    out = jax.block_until_ready(out)

    ref = reference_forward(x, params, H)
    assert out.shape == (B, T, D)
    err = float(jnp.max(jnp.abs(out - ref)))
    # bf16 matmul operands -> looser tolerance than a pure-f32 kernel.
    assert jnp.allclose(out, ref, rtol=2e-2, atol=2e-2), err

    print("KERNEL_OK")
</pallas_src>

<mosaic_0001>
module attributes {stable_mosaic.version = 11 : i64} {
  func.func @ln_qkv_kernel(%arg0: i32, %arg1: i32, %arg2: memref<1x16x32xf32, #tpu.memory_space<vmem>>, %arg3: memref<1x32xf32, #tpu.memory_space<vmem>>, %arg4: memref<1x32xf32, #tpu.memory_space<vmem>>, %arg5: memref<32x96xbf16, #tpu.memory_space<vmem>>, %arg6: memref<1x16x96xbf16, #tpu.memory_space<vmem>>) attributes {dimension_semantics = [#tpu.dimension_semantics<parallel>, #tpu.dimension_semantics<parallel>], iteration_bounds = array<i64: 2, 2>, scalar_prefetch = 0 : i64, scratch_operands = 0 : i64, tpu.core_type = #tpu.core_type<tc>, window_params = [{transform_indices = @transform_0, window_bounds = array<i64: 1, 16, 32>}, {pipeline_mode = #tpu.pipeline_mode<synchronous>, transform_indices = @transform_1, window_bounds = array<i64: 1, 32>}, {pipeline_mode = #tpu.pipeline_mode<synchronous>, transform_indices = @transform_2, window_bounds = array<i64: 1, 32>}, {pipeline_mode = #tpu.pipeline_mode<synchronous>, transform_indices = @transform_3, window_bounds = array<i64: 32, 96>}, {transform_indices = @transform_4, window_bounds = array<i64: 1, 16, 96>}]} {
    %c0 = arith.constant 0 : index
    %c0_0 = arith.constant 0 : index
    %c0_1 = arith.constant 0 : index
    %0 = vector.load %arg2[%c0, %c0_0, %c0_1] : memref<1x16x32xf32, #tpu.memory_space<vmem>>, vector<1x16x32xf32>
    %1 = vector.shape_cast %0 : vector<1x16x32xf32> to vector<16x32xf32>
    %cst = arith.constant dense<0.000000e+00> : vector<16xf32>
    %2 = vector.multi_reduction <add>, %1, %cst [1] : vector<16x32xf32> to vector<16xf32>
    %3 = vector.shape_cast %2 : vector<16xf32> to vector<16x1xf32>
    %cst_2 = arith.constant 3.200000e+01 : f32
    %4 = vector.broadcast %cst_2 : f32 to vector<16x1xf32>
    %5 = arith.divf %3, %4 : vector<16x1xf32>
    %6 = vector.broadcast %5 : vector<16x1xf32> to vector<16x32xf32>
    %7 = arith.subf %1, %6 : vector<16x32xf32>
    %8 = arith.mulf %7, %7 : vector<16x32xf32>
    %cst_3 = arith.constant dense<0.000000e+00> : vector<16xf32>
    %9 = vector.multi_reduction <add>, %8, %cst_3 [1] : vector<16x32xf32> to vector<16xf32>
    %10 = vector.shape_cast %9 : vector<16xf32> to vector<16x1xf32>
    %cst_4 = arith.constant 3.200000e+01 : f32
    %11 = vector.broadcast %cst_4 : f32 to vector<16x1xf32>
    %12 = arith.divf %10, %11 : vector<16x1xf32>
    %13 = vector.broadcast %5 : vector<16x1xf32> to vector<16x32xf32>
    %14 = arith.subf %1, %13 : vector<16x32xf32>
    %cst_5 = arith.constant 9.99999974E-6 : f32
    %15 = vector.broadcast %cst_5 : f32 to vector<16x1xf32>
    %16 = arith.addf %12, %15 : vector<16x1xf32>
    %17 = math.rsqrt %16 : vector<16x1xf32>
    %18 = vector.broadcast %17 : vector<16x1xf32> to vector<16x32xf32>
    %19 = arith.mulf %14, %18 : vector<16x32xf32>
    %c0_6 = arith.constant 0 : index
    %c0_7 = arith.constant 0 : index
    %20 = vector.load %arg3[%c0_6, %c0_7] : memref<1x32xf32, #tpu.memory_space<vmem>>, vector<1x32xf32>
    %21 = vector.broadcast %20 : vector<1x32xf32> to vector<16x32xf32>
    %22 = arith.mulf %19, %21 : vector<16x32xf32>
    %c0_8 = arith.constant 0 : index
    %c0_9 = arith.constant 0 : index
    %23 = vector.load %arg4[%c0_8, %c0_9] : memref<1x32xf32, #tpu.memory_space<vmem>>, vector<1x32xf32>
    %24 = vector.broadcast %23 : vector<1x32xf32> to vector<16x32xf32>
    %25 = arith.addf %22, %24 : vector<16x32xf32>
    %26 = arith.truncf %25 : vector<16x32xf32> to vector<16x32xbf16>
    %c0_10 = arith.constant 0 : index
    %c0_11 = arith.constant 0 : index
    %27 = vector.load %arg5[%c0_10, %c0_11] : memref<32x96xbf16, #tpu.memory_space<vmem>>, vector<32x96xbf16>
    %cst_12 = arith.constant dense<0.000000e+00> : vector<16x96xf32>
    %28 = tpu.matmul %26, %27, %cst_12 {dimension_numbers = #tpu.dot_dimension_numbers<[1], [0], [0], [1], [0, 0, 1, 1], [], []>} : vector<16x32xbf16>, vector<32x96xbf16>, vector<16x96xf32> -> vector<16x96xf32>
    %29 = arith.truncf %28 : vector<16x96xf32> to vector<16x96xbf16>
    %c0_13 = arith.constant 0 : index
    %c0_14 = arith.constant 0 : index
    %c0_15 = arith.constant 0 : index
    %30 = vector.load %arg6[%c0_13, %c0_14, %c0_15] : memref<1x16x96xbf16, #tpu.memory_space<vmem>>, vector<1x16x96xbf16>
    %31 = vector.shape_cast %30 : vector<1x16x96xbf16> to vector<16x96xbf16>
    %32 = vector.shape_cast %29 : vector<16x96xbf16> to vector<1x16x96xbf16>
    tpu.vector_store %arg6[%c0_13, %c0_14, %c0_15], %32 {strides = array<i32>} : memref<1x16x96xbf16, #tpu.memory_space<vmem>>, vector<1x16x96xbf16>,
    return
  }
  func.func @transform_0(%arg0: i32, %arg1: i32) -> (i32, i32, i32) {
    %c0_i32 = arith.constant 0 : i32
    %c0_i32_0 = arith.constant 0 : i32
    return %arg0, %arg1, %c0_i32 : i32, i32, i32
  }
  func.func @transform_1(%arg0: i32, %arg1: i32) -> (i32, i32) {
    %c0_i32 = arith.constant 0 : i32
    %c0_i32_0 = arith.constant 0 : i32
    %c0_i32_1 = arith.constant 0 : i32
    return %c0_i32, %c0_i32_0 : i32, i32
  }
  func.func @transform_2(%arg0: i32, %arg1: i32) -> (i32, i32) {
    %c0_i32 = arith.constant 0 : i32
    %c0_i32_0 = arith.constant 0 : i32
    %c0_i32_1 = arith.constant 0 : i32
    return %c0_i32, %c0_i32_0 : i32, i32
  }
  func.func @transform_3(%arg0: i32, %arg1: i32) -> (i32, i32) {
    %c0_i32 = arith.constant 0 : i32
    %c0_i32_0 = arith.constant 0 : i32
    %c0_i32_1 = arith.constant 0 : i32
    return %c0_i32, %c0_i32_0 : i32, i32
  }
  func.func @transform_4(%arg0: i32, %arg1: i32) -> (i32, i32, i32) {
    %c0_i32 = arith.constant 0 : i32
    %c0_i32_0 = arith.constant 0 : i32
    return %arg0, %arg1, %c0_i32 : i32, i32, i32
  }
}

</mosaic_0001>

<bundles_post_ra>
// kernel: tpu_custom_call.1
= control target key start
LH: loop header
LB: loop body
LE: loop exit
PB: predicated region body
PF: predicated region fallthrough
CT: control target
= control target key end

     0   :  { %s1031_s0 = inlined_call_operand.hbm [shape: f32[2,32,32], index: 0, kind: input, shape index: {}]   ;;  %s1032_s1 = inlined_call_operand.vmem [shape: f32[1,32], index: 1, kind: input, shape index: {}]   ;;  %s1033_s2 = inlined_call_operand.vmem [shape: f32[1,32], index: 2, kind: input, shape index: {}]   ;;  %s1034_s3 = inlined_call_operand.hbm [shape: bf16[32,96], index: 3, kind: input, shape index: {}]   ;;  %s1035_s4 = inlined_call_operand.hbm [shape: bf16[2,32,96], index: 4, kind: output, shape index: {}]  }
   0x1   :  { %1042 = sst [smem:[#allocation15_spill]] %s1034_s3 }
   0x2   :  { %1043 = sst [smem:[#allocation16_spill]] %s1035_s4 }
   0x3   :  { %9 = vsyncpa [#allocation3], 0 }
   0x4   :  { %11 = vsyncpa [#allocation3 + $0x1], 0 }
   0x5   :  { %12 = vsyncpa [#allocation6], 0 }
   0x6   :  { %13 = vsyncpa [#allocation4], 0 }
   0x7   :  { %15 = vsyncpa [#allocation4 + $0x1], 0  ;;  %s822_s15 = smov 0   ;;  %s824_s16 = smov 0  }
   0x8   :  { %s826_s17 = smov 0   ;;  %s828_s18 = smov 0  }
   0x9   :  { %s830_s19 = smov 0   ;;  %s832_s20 = smov 0  }
   0xa   :  { %s834_s21 = smov 0   ;;  %s836_s22 = smov 0  }
   0xb LB: > { %1044 = sst [smem:[#allocation11_spill]] %s756_s15  ;;  %s488_s23 = sadd.s32 4294967295, %s784_s22   ;;  %s784_s22 = sphi %s836_s22, %s21_s22   ;;  %s780_s21 = sphi %s834_s21, %s1068_s21   ;;  %s776_s20 = sphi %s832_s20, %s1063_s20   ;;  %s772_s19 = sphi %s830_s19, %s1067_s19   ;;  %s768_s18 = sphi %s828_s18, %s1062_s18   ;;  %s764_s17 = sphi %s826_s17, %s1066_s17   ;;  %s760_s16 = sphi %s824_s16, %s1065_s16   ;;  %s756_s15 = sphi %s822_s15, %s1064_s15  }
   0xc   : > { %1045 = sst [smem:[#allocation12_spill]] %s776_s20  ;;  %s489_s24 = sadd.s32 4294967294, %s784_s22  }
   0xd   : > { %p55_p0 = scmp.ne.s32.totalorder %s760_s16, %s756_s15  ;;  %p866_p1 = scmp.eq.s32.totalorder %s488_s23, 0 }
   0xe   : > { %p870_p2 = scmp.eq.s32.totalorder %s488_s23, 3  ;;  %p150_p3 = scmp.eq.s32.totalorder %s489_s24, 3 }
   0xf   : > { %p876_p4 = por %p866_p1, %p55_p0  ;;  %p490_p5 = scmp.ge.s32.totalorder %s784_s22, 1 }
  0x10   : > { %p881_p6 = por %p150_p3, %p55_p0  ;;  %p157_p7 = scmp.lt.s32.totalorder %s784_s22, 5 }
  0x11   : > { %s1048_s27 = scalar_select %p876_p4, 1, 0 }
  0x12   : > { %s1049_s28 = scalar_select %p881_p6, 1, 0 }
  0x13   : > { %p886_p8 = pnand %p490_p5, %p157_p7  ;;  %s786_s30 = smov [#allocation5]  }
  0x14   : > { %1050 = sst [smem:[#allocation13_spill]] %s1049_s28  ;;  %s175_s5 = sshll.u32 %s786_s30, 4  ;;  %s176_s5 = int_to_ptr.vmem [resolvable:$true] %s175_s5 }
  0x15   : > { %p535_p9 = pneg %p886_p8  ;;  %s641_s6 = scalar_lea.vmem %s176_s5, 256 }
  0x16   : > { %p642_p12 = scmp.ne.s32.totalorder %s176_s5, %s641_s6  ;;  %p649_p3 = scmp.lt.s32.totalorder %s176_s5, %s176_s5 }
  0x17   : > { %p536_p10 = pnand %p535_p9, %p866_p1  ;;  %p650_p6 = scmp.lt.s32.totalorder %s641_s6, %s641_s6 }
  0x19   : > { %p632_p11 = pneg %p536_p10  ;;  %p651_p4 = por %p650_p6, %p649_p3 }
  0x1b   : > { %p644_p13 = pnand %p642_p12, %p632_p11 }
  0x1d   : > { %p645_p0 = pneg %p644_p13 }
  0x1f   : > { %p652_p5 = pnand %p651_p4, %p645_p0 }
  0x21   : > { %655 = shalt.err (!%p652_p5)
}
  0x22   : > { %s787_s7 = smov 64   ;;  %s788_s8 = smov 4  }
  0x23   : > { %s1052_s3 = sld [smem:[#allocation15_spill]]  ;;  %s30_s11 = sadd.s32 1, %s776_s20 }
  0x24   : > { %p31_p4 = scmp.ge.s32.totalorder %s30_s11, 2  ;;  %s33_s12 = sadd.s32 1, %s780_s21 }
  0x25   : > { %s42_s13 = sadd.s32 1, %s764_s17  ;;  %p49_p6 = scmp.ne.s32.totalorder %s764_s17, %s760_s16 }
  0x26   : > { %s1070_s11 = smov (%p31_p4, %s30_s11), 0  ;;  %s1072_s12 = smov (!%p31_p4, %s33_s12), %s780_s21 }
  0x27   : > { %1053 = sst [smem:[#allocation14_spill]] %s1070_s11  ;;  %s38_s14 = ssub.s32 %s776_s20, %s1070_s11 }
  0x28   : > { %p50_p7 = scmp.eq.s32.totalorder %s784_s22, 0  ;;  %p35_p9 = scmp.ge.s32.totalorder %s1072_s12, 2 }
  0x29   : > { %538 = dma.hbm_to_vmem [thread:$0]  (!%p536_p10), %s1052_s3, 256, %s176_s5, [#allocation6], %s787_s7, %s787_s7, %s788_s8  }
  0x2a   : > { %p910_p11 = por %p870_p2, %p49_p6  ;;  %p914_p10 = por %p50_p7, %p49_p6 }
  0x2b   : > { %p548_p12 = scmp.lt.s32.totalorder %s784_s22, 4  ;;  %s1074_s12 = smov (%p35_p9, %s1072_s12), 0 }
  0x2c   : > { %s189_s30 = sand.u32 1, %s764_s17   ;;  %s494_s5 = sshll.u32 %s776_s20, 1 }
  0x2d   : > { %s37_s6 = ssub.s32 %s780_s21, %s1074_s12  ;;  %s493_s8 = sshll.u32 %s189_s30, 4 }
  0x2e   : > { %s39_s7 = sor.u32 %s38_s14, %s37_s6  ;;  %s495_s26 = sshll.u32 %s780_s21, 2 }
  0x2f   : > { %p40_p13 = scmp.eq.s32.totalorder %s39_s7, 0  ;;  %s193_s9 = scalar_lea.vmem [#allocation2], %s493_s8 }
  0x30   : > { %s202_s10 = sshll.u32 %s193_s9, 4  ;;  %s199_s11 = sadd.s32 %s495_s26, %s494_s5  ;;  %s203_s10 = int_to_ptr.vmem [resolvable:$true] %s202_s10 }
  0x31   : > { %s927_s3 = scalar_select %p40_p13, %s764_s17, %s42_s13  }
  0x32   : > { %s496_s28 = sshll.u32 %s199_s11, 7  ;;  %p933_p2 = pnand %p548_p12, %p914_p10 }
  0x33   : > { %s201_s14 = scalar_lea.hbm %s1031_s0, %s496_s28  ;;  %s190_s6 = scalar_lea.sflag [#allocation3], %s189_s30 }
  0x34   : > { %p658_p0 = pneg %p933_p2  ;;  %s669_s7 = scalar_lea.vmem %s203_s10, 256 }
  0x35   : > { %p670_p3 = scmp.ne.s32.totalorder %s203_s10, %s669_s7  ;;  %s789_s13 = smov [#allocation2]  }
  0x36   : > { %s674_s11 = sshll.u32 %s789_s13, 4  ;;  %s675_s11 = int_to_ptr.vmem [resolvable:$false] %s674_s11 }
  0x37   : > { %p672_p5 = pnand %p670_p3, %p658_p0  ;;  %s676_s24 = scalar_lea.vmem %s675_s11, 512 }
  0x38   : > { %p677_p6 = scmp.lt.s32.totalorder %s203_s10, %s675_s11  ;;  %p678_p7 = scmp.lt.s32.totalorder %s676_s24, %s669_s7 }
  0x39   : > { %p673_p4 = pneg %p672_p5 }
  0x3a   : > { %p679_p9 = por %p678_p7, %p677_p6 }
  0x3c   : > { %p680_p10 = pnand %p679_p9, %p673_p4 }
  0x3e   : > { %683 = shalt.err (!%p680_p10)
}
  0x3f   : > { %s790_s5 = smov 128   ;;  %s791_s4 = smov 8  }
  0x40   : > { %542 = dma.hbm_to_vmem [thread:$0]  (!%p933_p2), %s201_s14, 256, %s203_s10, %s190_s6, %s790_s5, %s790_s5, %s791_s4  }
  0x41   : > { %214 = sbr.rel (%p886_p8) target bundleno = 601 (0x259), region = 36  ;;  %s947_s20 = sand.u32 (!%p886_p8), 1, %s760_s16  }
  0x42   : > { %s498_s28 = sshll.u32 (!%p886_p8), %s947_s20, 4  ;;  %s217_s30 = scalar_lea.sflag (!%p886_p8), [#allocation3], %s947_s20 }
  0x43   : > { %s220_s8 = scalar_lea.vmem (!%p886_p8), [#allocation2], %s498_s28  ;;  %p1057_p12 = scmp.ne.s32.totalorder (!%p886_p8), %s1048_s27, 0 }
  0x46   : > { %743 = dma.done.wait (%p1057_p12), %s217_s30, 256  }
  0x47   : > { %745 = vsyncadd (%p1057_p12), %s217_s30, 4294967040 }
  0x48   : > { %747 = dma.done.wait (%p866_p1), [#allocation6], 256  }
  0x49   : > { %749 = vsyncadd (%p866_p1), [#allocation6], 4294967040  ;;  %vm254_vm0 = vcmask 261120   ;;  %v252_v0 = vld [vmem:[%s220_s8] sm:$0xff]  ;;  %v253_v1 = vld [vmem:[%s220_s8 + $0x8] sm:$0xff]  ;;  %v792_v15 = vmov 0.0  }
  0x4a   : > { %v255_v2 = vsel %vm254_vm0, %v252_v0, 0.0  ;;  %v258_v3 = vsel %vm254_vm0, %v253_v1, 0.0  ;;  %v624_v14 = vld [vmem:[#allocation5 + $0x8] sm:$0xff]   ;;  %519 = vmatprep.subr.bf16.mxu0 %v792_v15  ;;  %vm793_vm1 = vmmov 0   ;;  %v625_v16 = vld [vmem:[#allocation5] sm:$0xff]   ;;  %s509_s26 = sshll.u32 %s768_s18, 1 }
  0x4b   : > { %256 = vadd.xlane.f32.xlu0 %v255_v2  ;;  %523 = vmatprep.mubr.msk.bf16.mxu0 %vm793_vm1, %v792_v15  ;;  %v501_v25 = vld [vmem:[%s1032_s1] ss:$0 sm:$0xff]  ;;  %s510_s9 = sshll.u32 %s772_s19, 2  ;;  %s500_s10 = sshll.u32 %s947_s20, 3  ;;  %vm369_vm2 = vcmask 781312  }
  0x4c   : > { %520 = vmatpush3.bf16.msra.mxu0 %v624_v14  ;;  %v502_v29 = vld [vmem:[%s1033_s2] ss:$0 sm:$0xff]  ;;  %s385_s14 = sadd.s32 %s510_s9, %s509_s26  ;;  %s248_s6 = scalar_lea.vmem [#allocation7], %s500_s10 }
  0x4d   : > { %521 = vmatprep.subr.bf16.mxu0 %v792_v15  ;;  %s388_s7 = sshll.u32 %s248_s6, 4  ;;  %s511_s13 = sshll.u32 %s385_s14, 6  ;;  %s973_s7 = int_to_ptr.vmem [resolvable:$true] %s388_s7 }
  0x4e   : > { %s1058_s11 = sld [smem:[#allocation16_spill]]  ;;  %s373_s5 = scalar_lea.sflag [#allocation4], %s947_s20 }
  0x4f   : > { %259 = vadd.xlane.f32.xlu0 %v258_v3  ;;  %s684_s4 = scalar_lea.vmem %s973_s7, 128  ;;  %s794_s28 = smov [#allocation7]  }
  0x50   : > { %522 = vmatpush3.bf16.msra.mxu0 %v625_v16  ;;  %p685_p1 = scmp.ne.s32.totalorder %s973_s7, %s684_s4  ;;  %s688_s30 = sshll.u32 %s794_s28, 4  ;;  %s689_s30 = int_to_ptr.vmem [resolvable:$false] %s688_s30 }
  0x51   : > { %s690_s8 = scalar_lea.vmem %s689_s30, 256  ;;  %p691_p2 = scmp.lt.s32.totalorder %s973_s7, %s689_s30 }
  0x52   : > { %p686_p8 = pnand %p685_p1, %p910_p11  ;;  %p692_p0 = scmp.lt.s32.totalorder %s690_s8, %s684_s4 }
  0x54   : > { %s978_s24 = scalar_lea.hbm %s1058_s11, %s511_s13  ;;  %p687_p13 = pneg %p686_p8 }
  0x55   : > { %p693_p3 = por %p692_p0, %p691_p2 }
  0x57   : > { %p694_p5 = pnand %p693_p3, %p687_p13 }
  0xd4   : > { %v257_v4 = vpop.xlane.xlu0 %256 }
  0xd5   : > { %v262_v5 = vmul.f32 0.03125, %v257_v4 }
  0xd7   : > { %v264_v6 = vsub.f32 %v252_v0, %v262_v5 }
  0xd8   : > { %v260_v7 = vpop.xlane.xlu0 %259 }
  0xd9   : > { %v263_v8 = vmul.f32 0.03125, %v260_v7  ;;  %v266_v9 = vmul.f32 %v264_v6, %v264_v6 }
  0xdb   : > { %v265_v10 = vsub.f32 %v253_v1, %v263_v8  ;;  %v268_v11 = vsel %vm254_vm0, %v266_v9, 0.0 }
  0xdc   : > { %269 = vadd.xlane.f32.xlu1 %v268_v11 }
  0xdd   : > { %v267_v12 = vmul.f32 %v265_v10, %v265_v10 }
  0xdf   : > { %v271_v13 = vsel %vm254_vm0, %v267_v12, 0.0 }
  0xe0   : > { %272 = vadd.xlane.f32.xlu1 %v271_v13 }
 0x165   : > { %v270_v17 = vpop.xlane.xlu1 %269 }
 0x166   : > { %v274_v18 = vmul.f32 0.03125, %v270_v17 }
 0x168   : > { %v276_v19 = vadd.f32 1e-05, %v274_v18 }
 0x169   : > { %v273_v20 = vpop.xlane.xlu1 %272 }
 0x16a   : > { %626 = vrsqrt.f32 %v276_v19  ;;  %v275_v21 = vmul.f32 0.03125, %v273_v20 }
 0x16c   : > { %v277_v22 = vadd.f32 1e-05, %v275_v21 }
 0x16e   : > { %628 = vrsqrt.f32 %v277_v22 }
 0x177   : > { %v627_v23 = vpop.eup %626 }
 0x178   : > { %v280_v24 = vmul.f32 %v627_v23, %v264_v6 }
 0x17a   : > { %v289_v28 = vmul.f32 %v501_v25, %v280_v24 }
 0x17b   : > { %v629_v26 = vpop.eup %628 }
 0x17c   : > { %v281_v27 = vmul.f32 %v629_v26, %v265_v10  ;;  %v298_v31 = vadd.f32 %v502_v29, %v289_v28 }
 0x17e   : > { %v290_v30 = vmul.f32 %v501_v25, %v281_v27 }
 0x180   : > { %v299_v32 = vadd.f32 %v502_v29, %v290_v30 }
 0x182   : > { %v300_v33 = vpack.c.bf16 %v299_v32, %v298_v31 }
 0x184   : > { %524 = vmatmul.mubr.msk.bf16.vlgmr.msra.gmra.mxu0 %vm254_vm0, %v300_v33 }
 0x244   : > { %v354_v34 = vpop.f32.mrf.mxu0 }
 0x245   : > { %v514_v35 = vpack.c.bf16 %v354_v34, %v354_v34 }
 0x246   : > { %v525_v36 = vpop.f32.mrf.mxu0 }
 0x247   : > { %370 = vst.msk [vmem:[%s248_s6] sm:$0xf] %vm369_vm2, %v514_v35 }
 0x248   : > { %v357_v37 = vpop.f32.mrf.mxu0 }
 0x249   : > { %v515_v38 = vpack.c.bf16 %v357_v37, %v357_v37 }
 0x24a   : > { %v526_v39 = vpop.f32.mrf.mxu0 }
 0x24b   : > { %371 = vst.msk [vmem:[%s248_s6 + $0x4] sm:$0xf] %vm369_vm2, %v515_v38 }
 0x24c   : > { %697 = shalt.err (!%p694_p5)
}
 0x24d   : > { %s698_s15 = scalar_lea.hbm %s978_s24, 128  ;;  %s702_s29 = scalar_lea.hbm %s1058_s11, 512 }
 0x24e   : > { %p699_p4 = scmp.ne.s32.totalorder %s978_s24, %s698_s15  ;;  %p703_p9 = scmp.lt.s32.totalorder %s978_s24, %s1058_s11 }
 0x24f   : > { %p704_p10 = scmp.lt.s32.totalorder %s702_s29, %s698_s15 }
 0x250   : > { %p700_p6 = pnand %p699_p4, %p910_p11 }
 0x251   : > { %p705_p12 = por %p704_p10, %p703_p9 }
 0x252   : > { %p701_p7 = pneg %p700_p6 }
 0x254   : > { %p706_p1 = pnand %p705_p12, %p701_p7 }
 0x256   : > { %709 = shalt.err (!%p706_p1)
}
 0x257   : > { %s795_s10 = smov 64   ;;  %s796_s14 = smov 4  }
 0x258   : > { %533 = dma.vmem_to_hbm [thread:$0]  (%p910_p11), %s973_s7, 128, %s978_s24, %s373_s5, %s795_s10, %s795_s10, %s796_s14  }
 0x259 PF: > { %s1059_s6 = sld [smem:[#allocation11_spill]]  ;;  %p550_p8 = scmp.ge.s32.totalorder %s784_s22, 2 }
 0x25a   : > { %s1060_s13 = sld [smem:[#allocation13_spill]] }
 0x25f   : > { %s403_s18 = sand.u32 1, %s1059_s6  }
 0x260   : > { %p1061_p13 = scmp.ne.s32.totalorder %s1060_s13, 0  ;;  %s404_s19 = scalar_lea.sflag [#allocation4], %s403_s18 }
 0x262   : > { %p544_p2 = pnand %p550_p8, %p1061_p13 }
 0x264   : > { %p545_p0 = pneg %p544_p2 }
 0x266   : > { %751 = dma.done.wait (%p545_p0), %s404_s19, 128  }
 0x267   : > { %753 = vsyncadd (%p545_p0), %s404_s19, 4294967168  ;;  %s21_s22 = sadd.s32 1, %s784_s22   ;;  %s1062_s18 = sld [smem:[#allocation12_spill]] }
 0x268   : > { %p18_p3 = scmp.ge.s32.totalorder %s21_s22, 6   ;;  %s1063_s20 = sld [smem:[#allocation14_spill]] }
 0x269   : > { %s1064_s15 = smov %s760_s16  ;;  %s1065_s16 = smov %s764_s17 }
 0x26a   : > { %s1066_s17 = smov %s927_s3  ;;  %s1067_s19 = smov %s780_s21 }
 0x26b   : > { %s1068_s21 = smov %s1074_s12  ;;  %20 = sbr.rel (!%p18_p3) target bundleno = 11 (0xb), region = 85 }
 0x270   :  { %409 = vsyncpa [#allocation3], 1 }
 0x271   :  { %411 = vsyncpa [#allocation3 + $0x1], 1 }
 0x272   :  { %412 = vsyncpa [#allocation6], 1 }
 0x273   :  { %413 = vsyncpa [#allocation4], 1 }
 0x274   :  { %415 = vsyncpa [#allocation4 + $0x1], 1 }

</bundles_post_ra>
